<compile_context>
chip_gen: v6e
topology: v6e:2x2x1
jax: 0.10.0
libtpu: 0.0.40
codegen_flags: <defaults>
</compile_context>

<pallas_src>
import jax
import jax.numpy as jnp
from jax.experimental import pallas as pl
from jax.experimental.pallas import tpu as pltpu


def _pointwise_conv_kernel(x_ref, w_ref, b_ref, o_ref):
    """One (image, spatial-tile) block of the 1x1 conv, lane-dense on spatial.

    x_ref: (1, Cin, TN) bf16   w_ref: (Cout, Cin) bf16   b_ref: (Cout, 1) f32
    o_ref: (1, Cout, TN) f32
    """
    y = jnp.dot(w_ref[...], x_ref[0], preferred_element_type=jnp.float32)
    o_ref[0] = (y + b_ref[...]).astype(o_ref.dtype)


def _pick_spatial_tile(hw: int) -> int:
    """Largest lane-dense tile (multiple of 128) that divides H*W; else full H*W."""
    for t in (2048, 1024, 512, 256, 128):
        if hw % t == 0:
            return t
    return hw


def _pointwise_conv(x_flat_bf16, w_bf16, b_f32):
    """x_flat: (Nimg, Cin, HW) bf16 -> (Nimg, Cout, HW) f32 via one pallas_call."""
    n_img, cin, hw = x_flat_bf16.shape
    cout = w_bf16.shape[0]
    tn = _pick_spatial_tile(hw)
    grid = (n_img, hw // tn)

    return pl.pallas_call(
        _pointwise_conv_kernel,
        out_shape=jax.ShapeDtypeStruct((n_img, cout, hw), jnp.float32),
        grid=grid,
        in_specs=[
            pl.BlockSpec((1, cin, tn), lambda n, j: (n, 0, j)),
            pl.BlockSpec((cout, cin), lambda n, j: (0, 0)),
            pl.BlockSpec((cout, 1), lambda n, j: (0, 0)),
        ],
        out_specs=pl.BlockSpec((1, cout, tn), lambda n, j: (n, 0, j)),
        compiler_params=pltpu.CompilerParams(
            dimension_semantics=("parallel", "parallel"),
        ),
    )(x_flat_bf16, w_bf16, b_f32)


def generalized_tta_forward(x_nchw, weight, bias):
    """GeneralizedTTA(1x1 conv, d2_image_augment, d2_image_deaugment) forward.

    x_nchw: (B, Cin, H, W) f32; weight: (Cout, Cin); bias: (Cout,) -> (B, Cout, H, W) f32.
    """
    B, Cin, H, W = x_nchw.shape
    Cout = weight.shape[0]
    HW = H * W

    # Cast once, then augment: halves the HBM footprint of the augmented batch.
    x_bf = x_nchw.astype(jnp.bfloat16)

    # augment_fn = d2_image_augment: pure data movement, done in the wrapper.
    x_aug = jnp.concatenate(
        [x_bf, jnp.flip(x_bf, 2), jnp.flip(x_bf, 3), jnp.flip(x_bf, (2, 3))],
        axis=0,
    )  # (4B, Cin, H, W) bf16

    # NCHW is already channel-major / spatial-minor: free reshape, H*W on lanes.
    x_flat = x_aug.reshape(4 * B, Cin, HW)
    w = weight.astype(jnp.bfloat16)                  # (Cout, Cin)
    b = bias.reshape(Cout, 1).astype(jnp.float32)    # (Cout, 1)

    # model: one Pallas pointwise-conv over the whole augmented batch.
    y = _pointwise_conv(x_flat, w, b).reshape(4 * B, Cout, H, W)

    # deaugment_fn = d2_image_deaugment: undo flips, mean over the 4 augmentations.
    y0, y1, y2, y3 = jnp.split(y, 4, axis=0)
    return (y0 + jnp.flip(y1, 2) + jnp.flip(y2, 3) + jnp.flip(y3, (2, 3))) * 0.25


def _reference(x_nchw, weight, bias):
    """Pure-JAX replica of GeneralizedTTA(model=1x1 conv, d2 augment/deaugment)."""

    def model(x):
        return jnp.einsum(
            "bchw,oc->bohw", x, weight, precision=jax.lax.Precision.HIGHEST
        ) + bias[None, :, None, None]

    def augment(x):
        return jnp.concatenate(
            [x, jnp.flip(x, 2), jnp.flip(x, 3), jnp.flip(x, (2, 3))], axis=0
        )

    def deaugment(y):
        y0, y1, y2, y3 = jnp.split(y, 4, axis=0)
        return (y0 + jnp.flip(y1, 2) + jnp.flip(y2, 3) + jnp.flip(y3, (2, 3))) / 4.0

    return deaugment(model(augment(x_nchw)))


if __name__ == "__main__":
    key = jax.random.PRNGKey(0)
    kx, kw, kb = jax.random.split(key, 3)

    B, Cin, H, W = 2, 4, 16, 16
    Cout = 8

    x = jax.random.normal(kx, (B, Cin, H, W), dtype=jnp.float32)
    weight = jax.random.normal(kw, (Cout, Cin), dtype=jnp.float32) * 0.1  # 1x1 conv weight
    bias = jax.random.normal(kb, (Cout,), dtype=jnp.float32) * 0.1

    out = jax.block_until_ready(generalized_tta_forward(x, weight, bias))
    assert out.shape == (B, Cout, H, W), out.shape

    # The kernel intentionally feeds the MXU in bf16 (f32 accumulation), so the
    # reference is evaluated on the same bf16-rounded inputs to isolate kernel
    # correctness from the intended quantization.
    x_q = x.astype(jnp.bfloat16).astype(jnp.float32)
    w_q = weight.astype(jnp.bfloat16).astype(jnp.float32)
    ref = _reference(x_q, w_q, bias)
    max_err = float(jnp.max(jnp.abs(out - ref)))
    assert jnp.allclose(out, ref, rtol=1e-3, atol=1e-3), max_err

    print("KERNEL_OK")
</pallas_src>

<mosaic_0001>
module attributes {stable_mosaic.version = 11 : i64} {
  func.func @_pointwise_conv_kernel(%arg0: i32, %arg1: i32, %arg2: memref<1x4x256xbf16, #tpu.memory_space<vmem>>, %arg3: memref<8x4xbf16, #tpu.memory_space<vmem>>, %arg4: memref<8x1xf32, #tpu.memory_space<vmem>>, %arg5: memref<1x8x256xf32, #tpu.memory_space<vmem>>) attributes {dimension_semantics = [#tpu.dimension_semantics<parallel>, #tpu.dimension_semantics<parallel>], iteration_bounds = array<i64: 8, 1>, scalar_prefetch = 0 : i64, scratch_operands = 0 : i64, tpu.core_type = #tpu.core_type<tc>, window_params = [{transform_indices = @transform_0, window_bounds = array<i64: 1, 4, 256>}, {pipeline_mode = #tpu.pipeline_mode<synchronous>, transform_indices = @transform_1, window_bounds = array<i64: 8, 4>}, {pipeline_mode = #tpu.pipeline_mode<synchronous>, transform_indices = @transform_2, window_bounds = array<i64: 8, 1>}, {transform_indices = @transform_3, window_bounds = array<i64: 1, 8, 256>}]} {
    %c0 = arith.constant 0 : index
    %c0_0 = arith.constant 0 : index
    %0 = vector.load %arg3[%c0, %c0_0] : memref<8x4xbf16, #tpu.memory_space<vmem>>, vector<8x4xbf16>
    %c0_1 = arith.constant 0 : index
    %c0_2 = arith.constant 0 : index
    %c0_3 = arith.constant 0 : index
    %1 = vector.load %arg2[%c0_1, %c0_2, %c0_3] : memref<1x4x256xbf16, #tpu.memory_space<vmem>>, vector<1x4x256xbf16>
    %2 = vector.shape_cast %1 : vector<1x4x256xbf16> to vector<4x256xbf16>
    %cst = arith.constant dense<0.000000e+00> : vector<8x256xf32>
    %3 = tpu.matmul %0, %2, %cst {dimension_numbers = #tpu.dot_dimension_numbers<[1], [0], [0], [1], [0, 0, 1, 1], [], []>} : vector<8x4xbf16>, vector<4x256xbf16>, vector<8x256xf32> -> vector<8x256xf32>
    %c0_4 = arith.constant 0 : index
    %c0_5 = arith.constant 0 : index
    %4 = vector.load %arg4[%c0_4, %c0_5] : memref<8x1xf32, #tpu.memory_space<vmem>>, vector<8x1xf32>
    %5 = vector.broadcast %4 : vector<8x1xf32> to vector<8x256xf32>
    %6 = arith.addf %3, %5 : vector<8x256xf32>
    %c0_6 = arith.constant 0 : index
    %c0_7 = arith.constant 0 : index
    %c0_8 = arith.constant 0 : index
    %7 = vector.load %arg5[%c0_6, %c0_7, %c0_8] : memref<1x8x256xf32, #tpu.memory_space<vmem>>, vector<1x8x256xf32>
    %8 = vector.shape_cast %7 : vector<1x8x256xf32> to vector<8x256xf32>
    %9 = vector.shape_cast %6 : vector<8x256xf32> to vector<1x8x256xf32>
    tpu.vector_store %arg5[%c0_6, %c0_7, %c0_8], %9 {strides = array<i32>} : memref<1x8x256xf32, #tpu.memory_space<vmem>>, vector<1x8x256xf32>,
    return
  }
  func.func @transform_0(%arg0: i32, %arg1: i32) -> (i32, i32, i32) {
    %c0_i32 = arith.constant 0 : i32
    %c0_i32_0 = arith.constant 0 : i32
    return %arg0, %c0_i32, %arg1 : i32, i32, i32
  }
  func.func @transform_1(%arg0: i32, %arg1: i32) -> (i32, i32) {
    %c0_i32 = arith.constant 0 : i32
    %c0_i32_0 = arith.constant 0 : i32
    %c0_i32_1 = arith.constant 0 : i32
    return %c0_i32, %c0_i32_0 : i32, i32
  }
  func.func @transform_2(%arg0: i32, %arg1: i32) -> (i32, i32) {
    %c0_i32 = arith.constant 0 : i32
    %c0_i32_0 = arith.constant 0 : i32
    %c0_i32_1 = arith.constant 0 : i32
    return %c0_i32, %c0_i32_0 : i32, i32
  }
  func.func @transform_3(%arg0: i32, %arg1: i32) -> (i32, i32, i32) {
    %c0_i32 = arith.constant 0 : i32
    %c0_i32_0 = arith.constant 0 : i32
    return %arg0, %c0_i32, %arg1 : i32, i32, i32
  }
}

</mosaic_0001>

<bundles_post_ra>
// kernel: tpu_custom_call.1
= control target key start
LH: loop header
LB: loop body
LE: loop exit
PB: predicated region body
PF: predicated region fallthrough
CT: control target
= control target key end

     0   :  { %8 = vsyncpa [#allocation3], 0  ;;  %s748_s0 = inlined_call_operand.hbm [shape: bf16[8,4,256], index: 0, kind: input, shape index: {}]   ;;  %s749_s1 = inlined_call_operand.vmem [shape: bf16[8,4], index: 1, kind: input, shape index: {}]   ;;  %s750_s2 = inlined_call_operand.vmem [shape: f32[8,1], index: 2, kind: input, shape index: {}]   ;;  %s751_s3 = inlined_call_operand.hbm [shape: f32[8,8,256], index: 3, kind: output, shape index: {}]  }
   0x1   :  { %10 = vsyncpa [#allocation3 + $0x1], 0 }
   0x2   :  { %11 = vsyncpa [#allocation4], 0 }
   0x3   :  { %13 = vsyncpa [#allocation4 + $0x1], 0  ;;  %s597_s12 = smov 0   ;;  %s599_s13 = smov 0  }
   0x4   :  { %s601_s14 = smov 0   ;;  %s603_s15 = smov 0  }
   0x5   :  { %s605_s16 = smov 0   ;;  %s607_s17 = smov 0  }
   0x6 LB: > { %s380_s18 = sadd.s32 4294967295, %s572_s17   ;;  %s381_s19 = sadd.s32 4294967294, %s572_s17   ;;  %s572_s17 = sphi %s607_s17, %s19_s17   ;;  %s568_s16 = sphi %s605_s16, %s762_s16   ;;  %s564_s15 = sphi %s603_s15, %s761_s15   ;;  %s560_s14 = sphi %s601_s14, %s760_s14   ;;  %s556_s13 = sphi %s599_s13, %s759_s13   ;;  %s552_s12 = sphi %s597_s12, %s758_s12  }
   0x7   : > { %s31_s20 = sadd.s32 1, %s568_s16  ;;  %s40_s21 = sadd.s32 1, %s560_s14 }
   0x8   : > { %p33_p0 = scmp.ge.s32.totalorder %s31_s20, 8  ;;  %p47_p1 = scmp.ne.s32.totalorder %s560_s14, %s556_s13 }
   0x9   : > { %p48_p2 = scmp.eq.s32.totalorder %s572_s17, 0  ;;  %p53_p3 = scmp.ne.s32.totalorder %s556_s13, %s552_s12 }
   0xa   : > { %s764_s20 = smov (%p33_p0, %s31_s20), 0  ;;  %p54_p5 = scmp.eq.s32.totalorder %s380_s18, 0 }
   0xb   : > { %p638_p4 = por %p48_p2, %p47_p1  ;;  %s35_s23 = ssub.s32 %s568_s16, %s764_s20 }
   0xc   : > { %p121_p6 = scmp.eq.s32.totalorder %s380_s18, 7  ;;  %p38_p7 = scmp.eq.s32.totalorder %s35_s23, 0 }
   0xd   : > { %p644_p8 = por %p54_p5, %p53_p3  ;;  %p127_p10 = scmp.eq.s32.totalorder %s381_s19, 7 }
   0xe   : > { %p648_p9 = por %p121_p6, %p47_p1  ;;  %p412_p12 = scmp.lt.s32.totalorder %s572_s17, 8 }
   0xf   : > { %s653_s26 = scalar_select %p38_p7, %s560_s14, %s40_s21  }
  0x10   : > { %p655_p11 = por %p127_p10, %p53_p3  ;;  %s153_s28 = sand.u32 1, %s560_s14  }
  0x11   : > { %s384_s29 = sshll.u32 %s153_s28, 2  ;;  %s398_s30 = sshll.u32 %s568_s16, 6 }
  0x12   : > { %s755_s27 = scalar_select %p655_p11, 1, 0 }
  0x13   : > { %s165_s6 = scalar_lea.hbm %s748_s0, %s398_s30  ;;  %s157_s7 = scalar_lea.vmem [#allocation2], %s384_s29 }
  0x14   : > { %s167_s8 = sshll.u32 %s157_s7, 4  ;;  %p667_p13 = pnand %p412_p12, %p638_p4  ;;  %s168_s8 = int_to_ptr.vmem [resolvable:$true] %s167_s8 }
  0x15   : > { %p387_p0 = scmp.ge.s32.totalorder %s572_s17, 1  ;;  %p172_p1 = scmp.lt.s32.totalorder %s572_s17, 9 }
  0x16   : > { %s154_s10 = scalar_lea.sflag [#allocation3], %s153_s28  ;;  %p466_p2 = pneg %p667_p13 }
  0x17   : > { %s477_s11 = scalar_lea.vmem %s168_s8, 64  ;;  %s574_s18 = smov [#allocation2]  }
  0x18   : > { %p478_p3 = scmp.ne.s32.totalorder %s168_s8, %s477_s11  ;;  %s482_s19 = sshll.u32 %s574_s18, 4  ;;  %s483_s19 = int_to_ptr.vmem [resolvable:$false] %s482_s19 }
  0x19   : > { %s484_s21 = scalar_lea.vmem %s483_s19, 128  ;;  %p485_p7 = scmp.lt.s32.totalorder %s168_s8, %s483_s19 }
  0x1a   : > { %p480_p5 = pnand %p478_p3, %p466_p2  ;;  %p486_p10 = scmp.lt.s32.totalorder %s484_s21, %s477_s11 }
  0x1c   : > { %p481_p6 = pneg %p480_p5  ;;  %p487_p4 = por %p486_p10, %p485_p7 }
  0x1e   : > { %p488_p12 = pnand %p487_p4, %p481_p6 }
  0x20   : > { %491 = shalt.err (!%p488_p12)
}
  0x21   : > { %407 = dma.hbm_to_vmem [thread:$0]  (!%p667_p13), %s165_s6, 64, %s168_s8, %s154_s10  }
  0x22   : > { %p173_p11 = pnand %p387_p0, %p172_p1 }
  0x23   : > { %s682_s22 = sand.u32 (!%p173_p11), 1, %s556_s13  }
  0x24   : > { %176 = sbr.rel (%p173_p11) target bundleno = 261 (0x105), region = 32  ;;  %s388_s23 = sshll.u32 (!%p173_p11), %s682_s22, 2 }
  0x25   : > { %s179_s28 = scalar_lea.sflag (!%p173_p11), [#allocation3], %s682_s22  ;;  %s182_s29 = scalar_lea.vmem (!%p173_p11), [#allocation2], %s388_s23 }
  0x29   : > { %543 = dma.done.wait (%p644_p8), %s179_s28, 64  }
  0x2a   : > { %545 = vsyncadd (%p644_p8), %s179_s28, 4294967232  ;;  %v575_v0 = vmov 0   ;;  %vm229_vm0 = vcmask 1041408   ;;  %v210_v4 = vld [vmem:[%s750_s2] sm:$0xff]  ;;  %vm225_vm1 = vcmask 31744   ;;  %s389_s24 = sshll.u32 %s682_s22, 4 }
  0x2b   : > { %268 = vmatprep.mubr.bf16.mxu0 %v575_v0  ;;  %463 = vset.pattern.permute.xlu0 %v575_v0  ;;  %v390_v1 = vld.sshfl [vmem:[%s182_s29] sm:$0x33 pattern:$0x76325410]  ;;  %s399_s7 = sshll.u32 %s564_s15, 8  ;;  %s204_s8 = scalar_lea.vmem [#allocation5], %s389_s24 }
  0x2c   : > { %v224_v2 = vcombine.high %v390_v1, %v390_v1  ;;  %v231_v3 = vsel %vm229_vm0, %v390_v1, 0  ;;  %213 = vperm.xlu0 %463, %v210_v4   ;;  %v208_v5 = vld [vmem:[%s749_s1] sm:$0xf]  ;;  %s296_s9 = sshll.u32 %s204_s8, 4  ;;  %s701_s18 = scalar_lea.hbm %s751_s3, %s399_s7  ;;  %s703_s9 = int_to_ptr.vmem [resolvable:$true] %s296_s9 }
  0x2d   : > { %s280_s15 = scalar_lea.sflag [#allocation4], %s682_s22  ;;  %s492_s19 = scalar_lea.vmem %s703_s9, 256 }
  0x2e   : > { %391 = vmatprep.subr.msk.bf16.mxu0 %vm229_vm0, %v224_v2  ;;  %p493_p8 = scmp.ne.s32.totalorder %s703_s9, %s492_s19  ;;  %s576_s21 = smov [#allocation5]  }
  0x2f   : > { %251 = vmatpush1.bf16.msra.mxu0 %v231_v3  ;;  %s496_s23 = sshll.u32 %s576_s21, 4  ;;  %s497_s23 = int_to_ptr.vmem [resolvable:$false] %s496_s23 }
  0x30   : > { %p494_p11 = pnand %p493_p8, %p648_p9  ;;  %s498_s28 = scalar_lea.vmem %s497_s23, 512 }
  0x31   : > { %p499_p0 = scmp.lt.s32.totalorder %s703_s9, %s497_s23  ;;  %p500_p1 = scmp.lt.s32.totalorder %s498_s28, %s492_s19 }
  0x32   : > { %392 = vmatmul.mubr.msk.bf16.vlgmr.msra.gmra.mxu0 %vm225_vm1, %v208_v5  ;;  %p495_p13 = pneg %p494_p11 }
  0x33   : > { %p501_p2 = por %p500_p1, %p499_p0 }
  0x35   : > { %p502_p3 = pnand %p501_p2, %p495_p13 }
  0xa7   : > { %v214_v6 = vpop.permute.xlu0 %213 }
  0xf2   : > { %v270_v7 = vpop.f32.mrf.mxu0 }
  0xf3   : > { %v271_v8 = vadd.f32 %v270_v7, %v214_v6 }
  0xf4   : > { %v272_v9 = vpop.f32.mrf.mxu0 }
  0xf5   : > { %277 = vst [vmem:[%s204_s8] sm:$0xff] %v271_v8  ;;  %v273_v10 = vadd.f32 %v272_v9, %v214_v6 }
  0xf6   : > { %v274_v11 = vpop.f32.mrf.mxu0 }
  0xf7   : > { %278 = vst [vmem:[%s204_s8 + $0x8] sm:$0xff] %v273_v10 }
  0xf8   : > { %v275_v12 = vpop.f32.mrf.mxu0 }
  0xf9   : > { %505 = shalt.err (!%p502_p3)
}
  0xfa   : > { %s506_s29 = scalar_lea.hbm %s701_s18, 256  ;;  %s510_s4 = scalar_lea.hbm %s751_s3, 2048 }
  0xfb   : > { %p507_p5 = scmp.ne.s32.totalorder %s701_s18, %s506_s29  ;;  %p511_p10 = scmp.lt.s32.totalorder %s701_s18, %s751_s3 }
  0xfc   : > { %p512_p4 = scmp.lt.s32.totalorder %s510_s4, %s506_s29 }
  0xfd   : > { %p508_p6 = pnand %p507_p5, %p648_p9 }
  0xfe   : > { %p513_p12 = por %p512_p4, %p511_p10 }
  0xff   : > { %p509_p7 = pneg %p508_p6 }
 0x101   : > { %p514_p8 = pnand %p513_p12, %p509_p7 }
 0x103   : > { %517 = shalt.err (!%p514_p8)
}
 0x104   : > { %402 = dma.vmem_to_hbm [thread:$0]  (%p648_p9), %s703_s9, 256, %s701_s18, %s280_s15  }
 0x105 PF: > { %p413_p11 = scmp.ge.s32.totalorder %s572_s17, 2  ;;  %s308_s24 = sand.u32 1, %s552_s12  }
 0x106   : > { %p757_p13 = scmp.ne.s32.totalorder %s755_s27, 0  ;;  %s309_s7 = scalar_lea.sflag [#allocation4], %s308_s24 }
 0x108   : > { %p409_p0 = pnand %p413_p11, %p757_p13 }
 0x10a   : > { %p410_p1 = pneg %p409_p0 }
 0x10c   : > { %547 = dma.done.wait (%p410_p1), %s309_s7, 256  }
 0x10d   : > { %549 = vsyncadd (%p410_p1), %s309_s7, 4294967040  ;;  %s19_s17 = sadd.s32 1, %s572_s17   ;;  %s758_s12 = smov %s556_s13 }
 0x10e   : > { %p16_p2 = scmp.ge.s32.totalorder %s19_s17, 10   ;;  %s759_s13 = smov %s560_s14 }
 0x10f   : > { %s760_s14 = smov %s653_s26  ;;  %s761_s15 = smov %s568_s16 }
 0x110   : > { %s762_s16 = smov %s764_s20  ;;  %18 = sbr.rel (!%p16_p2) target bundleno = 6 (0x6), region = 77 }
 0x115   :  { %314 = vsyncpa [#allocation3], 1 }
 0x116   :  { %316 = vsyncpa [#allocation3 + $0x1], 1 }
 0x117   :  { %317 = vsyncpa [#allocation4], 1 }
 0x118   :  { %319 = vsyncpa [#allocation4 + $0x1], 1 }

</bundles_post_ra>
